<compile_context>
chip_gen: v7x
topology: tpu7x:2x2x1
jax: 0.10.0
libtpu: 0.0.40
codegen_flags: <defaults>
</compile_context>

<pallas_src>
import functools

import jax
import jax.numpy as jnp
from jax.experimental import pallas as pl
from jax.experimental.pallas import tpu as pltpu

_VMEM_LIMIT_BYTES = 32 * 1024 * 1024       # safe scoped VMEM on v5e/v6e/v7x
_BLOCK_BUDGET_BYTES = 16 * 1024 * 1024     # 2 bufs x (x block + out block)


def _se_kernel_per_batch(x_ref, w1_ref, w2_ref, o_ref, *, inv_hw):
    """Single-pass kernel: one grid step handles one batch element."""
    x = x_ref[...]                                        # (1, C, HW), native dtype
    # Squeeze: lane-axis partial sum in f32, then one multiply by 1/HW.
    y = jnp.sum(x, axis=-1, dtype=jnp.float32) * inv_hw   # (1, C)
    # Excitation: two tiny bias-free matmuls + ReLU, all in f32.
    z = jnp.maximum(
        jnp.dot(y, w1_ref[...].astype(jnp.float32),
                preferred_element_type=jnp.float32), 0.0)  # (1, C//r)
    g = jnp.maximum(
        jnp.dot(z, w2_ref[...].astype(jnp.float32),
                preferred_element_type=jnp.float32), 0.0)  # (1, C)
    # Scale: broadcast multiply in the input's native dtype (no f32 shadow).
    o_ref[...] = x * g.astype(x.dtype)[:, :, None]


def _se_kernel_tiled(x_ref, w1_ref, w2_ref, o_ref, sum_ref, gate_ref, *, inv_hw):
    """Two-phase kernel: grid = (B, phase, HW_tiles).

    phase 0: accumulate per-channel f32 sums over spatial tiles.
    phase 1: compute the gate once (tile 0), then rescale each spatial tile.
    """
    phase = pl.program_id(1)
    t = pl.program_id(2)

    @pl.when(jnp.logical_and(phase == 0, t == 0))
    def _():
        sum_ref[...] = jnp.zeros_like(sum_ref)

    @pl.when(phase == 0)
    def _():
        sum_ref[...] += jnp.sum(x_ref[...], axis=-1, dtype=jnp.float32)  # (1, C)

    @pl.when(jnp.logical_and(phase == 1, t == 0))
    def _():
        y = sum_ref[...] * inv_hw                                        # (1, C)
        z = jnp.maximum(
            jnp.dot(y, w1_ref[...].astype(jnp.float32),
                    preferred_element_type=jnp.float32), 0.0)
        gate_ref[...] = jnp.maximum(
            jnp.dot(z, w2_ref[...].astype(jnp.float32),
                    preferred_element_type=jnp.float32), 0.0)

    @pl.when(phase == 1)
    def _():
        x = x_ref[...]                                                   # (1, C, THW)
        o_ref[...] = x * gate_ref[...].astype(x.dtype)[:, :, None]


def se_module_pallas(x_nchw, w1, w2, *, block_budget_bytes=_BLOCK_BUDGET_BYTES):
    """x_nchw: (B, C, H, W); w1: (C//r, C) (torch Linear layout); w2: (C, C//r)."""
    b, c, h, w = x_nchw.shape
    hw = h * w
    cr = w1.shape[0]
    assert w1.shape == (cr, c) and w2.shape == (c, cr)

    w1_t = jnp.transpose(w1)   # (C, C//r)
    w2_t = jnp.transpose(w2)   # (C//r, C)

    itemsize = jnp.dtype(x_nchw.dtype).itemsize
    # Per-grid-step footprint with 2-deep pipelining: 2 bufs x (x block + out block).
    per_batch_bytes = 4 * c * hw * itemsize

    if per_batch_bytes <= block_budget_bytes:
        # ---- Fast path: per-batch-resident block, x read from HBM once. ----
        x3 = x_nchw.reshape(b, c, hw)
        kernel = functools.partial(_se_kernel_per_batch, inv_hw=1.0 / hw)
        out3 = pl.pallas_call(
            kernel,
            out_shape=jax.ShapeDtypeStruct((b, c, hw), x_nchw.dtype),
            grid=(b,),
            in_specs=[
                pl.BlockSpec((1, c, hw), lambda i: (i, 0, 0)),
                pl.BlockSpec((c, cr), lambda i: (0, 0)),
                pl.BlockSpec((cr, c), lambda i: (0, 0)),
            ],
            out_specs=pl.BlockSpec((1, c, hw), lambda i: (i, 0, 0)),
            compiler_params=pltpu.CompilerParams(
                dimension_semantics=("parallel",),
                vmem_limit_bytes=_VMEM_LIMIT_BYTES),
        )(x3, w1_t, w2_t)
        return out3.reshape(b, c, h, w)

    # ---- Large path: two-phase spatial tiling (reduce, then scale). ----
    # Spatial tile: largest multiple of 128 that fits the budget.
    max_thw = max(128, (block_budget_bytes // (4 * c * itemsize)) // 128 * 128)
    thw = min(max_thw, pl.cdiv(hw, 128) * 128)
    hw_pad = pl.cdiv(hw, thw) * thw
    n_tiles = hw_pad // thw

    x3 = x_nchw.reshape(b, c, hw)
    if hw_pad != hw:
        # Zero padding: contributes nothing to the sum; padded outputs sliced off.
        x3 = jnp.pad(x3, ((0, 0), (0, 0), (0, hw_pad - hw)))

    kernel = functools.partial(_se_kernel_tiled, inv_hw=1.0 / hw)
    out3 = pl.pallas_call(
        kernel,
        out_shape=jax.ShapeDtypeStruct((b, c, hw_pad), x_nchw.dtype),
        grid=(b, 2, n_tiles),
        in_specs=[
            pl.BlockSpec((1, c, thw), lambda i, p, t: (i, 0, t)),
            pl.BlockSpec((c, cr), lambda i, p, t: (0, 0)),
            pl.BlockSpec((cr, c), lambda i, p, t: (0, 0)),
        ],
        # Output block held at tile 0 through phase 0 (never written back with
        # garbage), then walked tile-by-tile in phase 1 -> each block is
        # visited in exactly one contiguous run.
        out_specs=pl.BlockSpec((1, c, thw), lambda i, p, t: (i, 0, t * p)),
        scratch_shapes=[
            pltpu.VMEM((1, c), jnp.float32),   # running per-channel sums
            pltpu.VMEM((1, c), jnp.float32),   # per-batch gate
        ],
        compiler_params=pltpu.CompilerParams(
            dimension_semantics=("parallel", "arbitrary", "arbitrary"),
            vmem_limit_bytes=_VMEM_LIMIT_BYTES),
    )(x3, w1_t, w2_t)
    out3 = out3[:, :, :hw]
    return out3.reshape(b, c, h, w)


def se_module_ref(x_nchw, w1, w2):
    y = jnp.mean(x_nchw, axis=(2, 3))                    # (B, C)
    z = jnp.maximum(y @ w1.T, 0.0)                       # (B, C//r)
    s = jnp.maximum(z @ w2.T, 0.0)                       # (B, C)
    return x_nchw * s[:, :, None, None]


if __name__ == "__main__":
    key = jax.random.PRNGKey(0)
    b, c, h, w = 2, 8, 16, 16
    reduction = 4
    cr = c // reduction

    kx, k1, k2 = jax.random.split(key, 3)
    x = jax.random.normal(kx, (b, c, h, w), dtype=jnp.float32)
    # torch nn.Linear(channel, channel//reduction, bias=False).weight -> (C//r, C)
    w1 = jax.random.normal(k1, (cr, c), dtype=jnp.float32) * 0.5
    # torch nn.Linear(channel//reduction, channel, bias=False).weight -> (C, C//r)
    w2 = jax.random.normal(k2, (c, cr), dtype=jnp.float32) * 0.5

    ref = se_module_ref(x, w1, w2)

    # Path 1: per-batch-resident fast path.
    out = se_module_pallas(x, w1, w2)
    jax.block_until_ready(out)
    assert jnp.allclose(out, ref, atol=1e-5, rtol=1e-5), "fast path mismatch"

    # Path 2: force the two-phase spatially-tiled path with a tiny budget
    # (exercises the large-C*HW code path at small shapes).
    out_tiled = se_module_pallas(x, w1, w2, block_budget_bytes=4096)
    jax.block_until_ready(out_tiled)
    assert jnp.allclose(out_tiled, ref, atol=1e-5, rtol=1e-5), "tiled path mismatch"

    print("KERNEL_OK")
</pallas_src>

<mosaic_0001>
module attributes {stable_mosaic.version = 11 : i64} {
  func.func @_se_kernel_per_batch(%arg0: i32, %arg1: memref<1x8x256xf32, #tpu.memory_space<vmem>>, %arg2: memref<8x2xf32, #tpu.memory_space<vmem>>, %arg3: memref<2x8xf32, #tpu.memory_space<vmem>>, %arg4: memref<1x8x256xf32, #tpu.memory_space<vmem>>) attributes {dimension_semantics = [#tpu.dimension_semantics<parallel>], iteration_bounds = array<i64: 2>, scalar_prefetch = 0 : i64, scratch_operands = 0 : i64, tpu.core_type = #tpu.core_type<tc>, window_params = [{transform_indices = @transform_0, window_bounds = array<i64: 1, 8, 256>}, {pipeline_mode = #tpu.pipeline_mode<synchronous>, transform_indices = @transform_1, window_bounds = array<i64: 8, 2>}, {pipeline_mode = #tpu.pipeline_mode<synchronous>, transform_indices = @transform_2, window_bounds = array<i64: 2, 8>}, {transform_indices = @transform_3, window_bounds = array<i64: 1, 8, 256>}]} {
    %c0 = arith.constant 0 : index
    %c0_0 = arith.constant 0 : index
    %c0_1 = arith.constant 0 : index
    %0 = vector.load %arg1[%c0, %c0_0, %c0_1] : memref<1x8x256xf32, #tpu.memory_space<vmem>>, vector<1x8x256xf32>
    %cst = arith.constant dense<0.000000e+00> : vector<1x8xf32>
    %1 = vector.multi_reduction <add>, %0, %cst [2] : vector<1x8x256xf32> to vector<1x8xf32>
    %cst_2 = arith.constant 3.906250e-03 : f32
    %2 = vector.broadcast %cst_2 : f32 to vector<1x8xf32>
    %3 = arith.mulf %1, %2 : vector<1x8xf32>
    %c0_3 = arith.constant 0 : index
    %c0_4 = arith.constant 0 : index
    %4 = vector.load %arg2[%c0_3, %c0_4] : memref<8x2xf32, #tpu.memory_space<vmem>>, vector<8x2xf32>
    %cst_5 = arith.constant dense<0.000000e+00> : vector<1x2xf32>
    %5 = tpu.matmul %3, %4, %cst_5 {dimension_numbers = #tpu.dot_dimension_numbers<[1], [0], [0], [1], [0, 0, 1, 1], [], []>} : vector<1x8xf32>, vector<8x2xf32>, vector<1x2xf32> -> vector<1x2xf32>
    %cst_6 = arith.constant 0.000000e+00 : f32
    %6 = vector.broadcast %cst_6 : f32 to vector<1x2xf32>
    %7 = arith.maximumf %5, %6 : vector<1x2xf32>
    %c0_7 = arith.constant 0 : index
    %c0_8 = arith.constant 0 : index
    %8 = vector.load %arg3[%c0_7, %c0_8] : memref<2x8xf32, #tpu.memory_space<vmem>>, vector<2x8xf32>
    %cst_9 = arith.constant dense<0.000000e+00> : vector<1x8xf32>
    %9 = tpu.matmul %7, %8, %cst_9 {dimension_numbers = #tpu.dot_dimension_numbers<[1], [0], [0], [1], [0, 0, 1, 1], [], []>} : vector<1x2xf32>, vector<2x8xf32>, vector<1x8xf32> -> vector<1x8xf32>
    %cst_10 = arith.constant 0.000000e+00 : f32
    %10 = vector.broadcast %cst_10 : f32 to vector<1x8xf32>
    %11 = arith.maximumf %9, %10 : vector<1x8xf32>
    %12 = vector.shape_cast %11 : vector<1x8xf32> to vector<1x8x1xf32>
    %13 = vector.broadcast %12 : vector<1x8x1xf32> to vector<1x8x256xf32>
    %14 = arith.mulf %0, %13 : vector<1x8x256xf32>
    %c0_11 = arith.constant 0 : index
    %c0_12 = arith.constant 0 : index
    %c0_13 = arith.constant 0 : index
    %15 = vector.load %arg4[%c0_11, %c0_12, %c0_13] : memref<1x8x256xf32, #tpu.memory_space<vmem>>, vector<1x8x256xf32>
    tpu.vector_store %arg4[%c0_11, %c0_12, %c0_13], %14 {strides = array<i32>} : memref<1x8x256xf32, #tpu.memory_space<vmem>>, vector<1x8x256xf32>,
    return
  }
  func.func @transform_0(%arg0: i32) -> (i32, i32, i32) {
    %c0_i32 = arith.constant 0 : i32
    %c0_i32_0 = arith.constant 0 : i32
    %c0_i32_1 = arith.constant 0 : i32
    return %arg0, %c0_i32, %c0_i32_0 : i32, i32, i32
  }
  func.func @transform_1(%arg0: i32) -> (i32, i32) {
    %c0_i32 = arith.constant 0 : i32
    %c0_i32_0 = arith.constant 0 : i32
    %c0_i32_1 = arith.constant 0 : i32
    return %c0_i32, %c0_i32_0 : i32, i32
  }
  func.func @transform_2(%arg0: i32) -> (i32, i32) {
    %c0_i32 = arith.constant 0 : i32
    %c0_i32_0 = arith.constant 0 : i32
    %c0_i32_1 = arith.constant 0 : i32
    return %c0_i32, %c0_i32_0 : i32, i32
  }
  func.func @transform_3(%arg0: i32) -> (i32, i32, i32) {
    %c0_i32 = arith.constant 0 : i32
    %c0_i32_0 = arith.constant 0 : i32
    %c0_i32_1 = arith.constant 0 : i32
    return %arg0, %c0_i32, %c0_i32_0 : i32, i32, i32
  }
}

</mosaic_0001>

<bundles_post_ra>
// kernel: tpu_custom_call.1
= control target key start
LH: loop header
LB: loop body
LE: loop exit
PB: predicated region body
PF: predicated region fallthrough
CT: control target
= control target key end

     0   :  { %8 = vsyncpa [#allocation3], 0  ;;  %s825_s0 = inlined_call_operand.hbm [shape: f32[2,8,256], index: 0, kind: input, shape index: {}]   ;;  %s826_s1 = inlined_call_operand.vmem [shape: f32[8,2], index: 1, kind: input, shape index: {}]   ;;  %s827_s2 = inlined_call_operand.vmem [shape: f32[2,8], index: 2, kind: input, shape index: {}]   ;;  %s828_s3 = inlined_call_operand.hbm [shape: f32[2,8,256], index: 3, kind: output, shape index: {}]  }
   0x1   :  { %10 = vsyncpa [#allocation3 + $0x1], 0 }
   0x2   :  { %11 = vsyncpa [#allocation4], 0 }
   0x3   :  { %13 = vsyncpa [#allocation4 + $0x1], 0  ;;  %s654_s12 = smov 0   ;;  %s656_s13 = smov 0  }
   0x4   :  { %s658_s14 = smov 0   ;;  %s660_s15 = smov 0  }
   0x5 LB: > { %s675_s16 = sadd.s32 4294967295, %s628_s15   ;;  %s451_s17 = sadd.s32 4294967294, %s628_s15   ;;  %s628_s15 = sphi %s660_s15, %s843_s15   ;;  %s624_s14 = sphi %s658_s14, %s842_s14   ;;  %s620_s13 = sphi %s656_s13, %s841_s13   ;;  %s616_s12 = sphi %s654_s12, %s840_s12  }
   0x6   : > { %s679_s18 = sadd.s32 1, %s628_s15   ;;  %s26_s19 = sadd.s32 1, %s624_s14 }
   0x7   : > { %s23_s20 = ssub.s32 %s628_s15, %s679_s18  ;;  %p33_p0 = scmp.ne.s32.totalorder %s624_s14, %s620_s13 }
   0x8   : > { %p24_p1 = scmp.eq.s32.totalorder %s23_s20, 0  ;;  %p34_p2 = scmp.eq.s32.totalorder %s628_s15, 0 }
   0x9   : > { %p39_p3 = scmp.ne.s32.totalorder %s620_s13, %s616_s12  ;;  %p40_p4 = scmp.eq.s32.totalorder %s675_s16, 0 }
   0xa   : > { %s691_s21 = scalar_select %p24_p1, %s624_s14, %s26_s19  }
   0xb   : > { %p693_p5 = por %p34_p2, %p33_p0  ;;  %p697_p6 = por %p40_p4, %p39_p3 }
   0xc   : > { %p105_p7 = scmp.eq.s32.totalorder %s675_s16, 1  ;;  %p111_p8 = scmp.eq.s32.totalorder %s451_s17, 1 }
   0xd   : > { %p496_p10 = scmp.lt.s32.totalorder %s628_s15, 2  ;;  %s137_s26 = sand.u32 1, %s624_s14  }
   0xe   : > { %p704_p11 = por %p105_p7, %p33_p0  ;;  %p708_p12 = por %p111_p8, %p39_p3 }
   0xf   : > { %s468_s27 = sshll.u32 %s628_s15, 8  ;;  %s454_s28 = sshll.u32 %s137_s26, 4 }
  0x10   : > { %s832_s24 = scalar_select %p704_p11, 1, 0 }
  0x11   : > { %s833_s25 = scalar_select %p708_p12, 1, 0 }
  0x12   : > { %s717_s4 = scalar_lea.hbm %s825_s0, %s468_s27  ;;  %s141_s5 = scalar_lea.vmem [#allocation2], %s454_s28 }
  0x13   : > { %s149_s6 = sshll.u32 %s141_s5, 4  ;;  %p721_p13 = pnand %p496_p10, %p693_p5  ;;  %s725_s6 = int_to_ptr.vmem [resolvable:$true] %s149_s6 }
  0x14   : > { %s138_s8 = scalar_lea.sflag [#allocation3], %s137_s26  ;;  %s532_s9 = scalar_lea.hbm %s717_s4, 256 }
  0x15   : > { %p533_p2 = scmp.ne.s32.totalorder %s717_s4, %s532_s9  ;;  %p534_p3 = pneg %p721_p13 }
  0x16   : > { %s537_s17 = scalar_lea.hbm %s825_s0, 512  ;;  %p538_p5 = scmp.lt.u32.totalorder %s717_s4, %s825_s0 }
  0x17   : > { %p535_p4 = pnand %p534_p3, %p533_p2  ;;  %p539_p8 = scmp.lt.u32.totalorder %s537_s17, %s532_s9 }
  0x18   : > { %p541_p9 = scmp.lt.u32.totalorder %s532_s9, %s717_s4 }
  0x19   : > { %p536_p7 = pneg %p535_p4  ;;  %p540_p10 = por %p539_p8, %p538_p5 }
  0x1b   : > { %p542_p0 = por %p541_p9, %p540_p10 }
  0x1d   : > { %p543_p1 = pnand %p542_p0, %p536_p7 }
  0x1f   : > { %546 = shalt.err (!%p543_p1)
}
  0x20   : > { %s547_s22 = scalar_lea.vmem %s725_s6, 256  ;;  %s630_s26 = smov [#allocation2]  }
  0x21   : > { %p548_p2 = scmp.ne.s32.totalorder %s725_s6, %s547_s22  ;;  %s552_s27 = sshll.u32 %s630_s26, 4  ;;  %s553_s27 = int_to_ptr.vmem [resolvable:$false] %s552_s27 }
  0x22   : > { %s554_s28 = scalar_lea.vmem %s553_s27, 512  ;;  %p555_p11 = scmp.lt.s32.totalorder %s725_s6, %s553_s27 }
  0x23   : > { %p550_p4 = pnand %p548_p2, %p534_p3  ;;  %p556_p5 = scmp.lt.s32.totalorder %s554_s28, %s547_s22 }
  0x25   : > { %p551_p12 = pneg %p550_p4  ;;  %p557_p8 = por %p556_p5, %p555_p11 }
  0x27   : > { %p558_p9 = pnand %p557_p8, %p551_p12 }
  0x29   : > { %561 = shalt.err (!%p558_p9)
}
  0x2a   : > { %491 = dma.hbm_to_vmem [thread:$0]  (!%p721_p13), %s717_s4, 256, %s725_s6, %s138_s8  }
  0x2b   : > { %p835_p0 = scmp.lt.s32.totalorder %s628_s15, 3  ;;  %p836_p1 = scmp.ge.s32.totalorder %s628_s15, 1 }
  0x2d   : > { %p155_p3 = pnand %p836_p1, %p835_p0 }
  0x2e   : > { %s759_s29 = sand.u32 (!%p155_p3), 1, %s620_s13  }
  0x2f   : > { %158 = sbr.rel (%p155_p3) target bundleno = 765 (0x2fd), region = 32  ;;  %s458_s30 = sshll.u32 (!%p155_p3), %s759_s29, 4 }
  0x30   : > { %s161_s5 = scalar_lea.sflag (!%p155_p3), [#allocation3], %s759_s29  ;;  %s164_s7 = scalar_lea.vmem (!%p155_p3), [#allocation2], %s458_s30 }
  0x36   : > { %607 = dma.done.wait (%p697_p6), %s161_s5, 256  }
  0x37   : > { %609 = vsyncadd (%p697_p6), %s161_s5, 4294967040  ;;  %v187_v0 = vld [vmem:[%s164_s7] sm:$0xff]  ;;  %v188_v1 = vld [vmem:[%s164_s7 + $0x8] sm:$0xff]  ;;  %v631_v3 = vmov 0.0   ;;  %vm632_vm0 = vmmov 0   ;;  %v195_v5 = vlaneseq  ;;  %vm201_vm1 = vcmask 64512  }
  0x38   : > { %v189_v2 = vadd.f32 %v188_v1, %v187_v0  ;;  %474 = vmatprep.subr.mxu0 %v631_v3  ;;  %v193_v4 = vld [vmem:[%s826_s1] sm:$0xff]  ;;  %479 = vmatprep.subr.mxu1 %v631_v3  ;;  %vm280_vm2 = vcmask 1041408   ;;  %vm276_vm3 = vcmask 15360   ;;  %s469_s9 = sshll.u32 %s675_s16, 8  ;;  %s186_s10 = scalar_lea.vmem [#allocation5], %s458_s30 }
  0x39   : > { %475 = vmatpush3.msra.mxu0 %v193_v4  ;;  %476 = vmatprep.mubr.msk.f32.mxu0 %vm632_vm0, %v631_v3  ;;  %v196_v6 = vand.u32 127, %v195_v5  ;;  %v198_v7 = vshrl.u32 %v195_v5, 7  ;;  %v275_v12 = vld [vmem:[%s827_s2] sm:$0x3]  ;;  %s381_s11 = sshll.u32 %s186_s10, 4  ;;  %s781_s20 = scalar_lea.hbm %s828_s3, %s469_s9  ;;  %s783_s11 = int_to_ptr.vmem [resolvable:$true] %s381_s11 }
  0x3a   : > { %190 = vadd.xlane.f32.xlu0 %v189_v2  ;;  %481 = vmatprep.mubr.msk.f32.mxu1 %vm632_vm0, %v631_v3  ;;  %s367_s22 = scalar_lea.sflag [#allocation4], %s759_s29  ;;  %s562_s16 = scalar_lea.vmem %s783_s11, 256 }
  0x3b   : > { %v199_v8 = vsub.s32 %v196_v6, %v198_v7  ;;  %480 = vmatpush3.msk.msra.mxu1 %vm280_vm2, %v275_v12  ;;  %v357_v16 = vsub.s32 0, %v198_v7  ;;  %p563_p6 = scmp.ne.s32.totalorder %s783_s11, %s562_s16  ;;  %p837_p11 = scmp.ne.s32.totalorder %s832_s24, 0 }
  0x3c   : > { %s633_s26 = smov [#allocation5]  }
  0x3d   : > { %p564_p12 = pnand %p563_p6, %p837_p11  ;;  %s566_s27 = sshll.u32 %s633_s26, 4  ;;  %s567_s27 = int_to_ptr.vmem [resolvable:$false] %s566_s27 }
  0x3e   : > { %s568_s28 = scalar_lea.vmem %s567_s27, 512  ;;  %p569_p7 = scmp.lt.s32.totalorder %s783_s11, %s567_s27 }
  0x3f   : > { %p565_p13 = pneg %p564_p12  ;;  %p570_p10 = scmp.lt.s32.totalorder %s568_s28, %s562_s16 }
  0x41   : > { %p571_p2 = por %p570_p10, %p569_p7 }
  0x43   : > { %p572_p4 = pnand %p571_p2, %p565_p13 }
  0xc7   : > { %v191_v9 = vpop.xlane.xlu0 %190 }
  0xc8   : > { %v192_v10 = vmul.f32 0.00390625, %v191_v9 }
  0xca   : > { %v200_v11 = vrot.slane %v192_v10, %v199_v8 }
  0xcc   : > { %477 = vmatmul.mubr.msk.f32.vlgmr.msra.gmra.mrb[0].mxu0 %vm201_vm1, %v200_v11 }
 0x19f   : > { %v270_v13 = vpop.f32.mrb[0].mxu0 }
 0x1a0   : > { %v274_v14 = vmax.f32 %v270_v13, 0.0  ;;  %v478_v15 = vpop.f32.mrb[1].mxu0 }
 0x1a2   : > { %482 = vmatmul.mubr.msk.f32.vlgmr.msra.gmra.mrb[0].mxu1 %vm276_vm3, %v274_v14 }
 0x275   : > { %v350_v17 = vpop.f32.mrb[0].mxu1 }
 0x276   : > { %v354_v18 = vmax.f32 %v350_v17, 0.0  ;;  %v483_v19 = vpop.f32.mrb[1].mxu1 }
 0x278   : > { %v358_v20 = vrot.slane %v354_v18, %v357_v16 }
 0x27a   : > { %360 = vbcast.lane.b32.xlu0 %v358_v20, 256 }
 0x2ec   : > { %v361_v21 = vpop.permute.xlu0 %360 }
 0x2ed   : > { %v362_v22 = vmul.f32 %v361_v21, %v187_v0  ;;  %v363_v23 = vmul.f32 %v361_v21, %v188_v1 }
 0x2ef   : > { %364 = vst [vmem:[%s186_s10] sm:$0xff] %v362_v22  ;;  %365 = vst [vmem:[%s186_s10 + $0x8] sm:$0xff] %v363_v23 }
 0x2f0   : > { %575 = shalt.err (!%p572_p4)
}
 0x2f1   : > { %s576_s29 = scalar_lea.hbm %s781_s20, 256  ;;  %s580_s7 = scalar_lea.hbm %s828_s3, 512 }
 0x2f2   : > { %p577_p5 = scmp.ne.s32.totalorder %s781_s20, %s576_s29  ;;  %p581_p0 = scmp.lt.u32.totalorder %s781_s20, %s828_s3 }
 0x2f3   : > { %p582_p1 = scmp.lt.u32.totalorder %s580_s7, %s576_s29  ;;  %p584_p6 = scmp.lt.u32.totalorder %s576_s29, %s781_s20 }
 0x2f4   : > { %p578_p8 = pnand %p577_p5, %p837_p11 }
 0x2f5   : > { %p583_p3 = por %p582_p1, %p581_p0 }
 0x2f6   : > { %p579_p9 = pneg %p578_p8 }
 0x2f7   : > { %p585_p12 = por %p584_p6, %p583_p3 }
 0x2f9   : > { %p586_p13 = pnand %p585_p12, %p579_p9 }
 0x2fb   : > { %589 = shalt.err (!%p586_p13)
}
 0x2fc   : > { %486 = dma.vmem_to_hbm [thread:$0]  (%p837_p11), %s783_s11, 256, %s781_s20, %s367_s22  }
 0x2fd PF: > { %s393_s23 = sand.u32 1, %s616_s12   ;;  %p838_p7 = scmp.ne.s32.totalorder %s833_s25, 0 }
 0x2fe   : > { %p839_p10 = scmp.ge.s32.totalorder %s628_s15, 2  ;;  %s394_s8 = scalar_lea.sflag [#allocation4], %s393_s23 }
 0x300   : > { %p493_p2 = pnand %p839_p10, %p838_p7 }
 0x302   : > { %611 = dma.done.wait (!%p493_p2), %s394_s8, 256  }
 0x303   : > { %613 = vsyncadd (!%p493_p2), %s394_s8, 4294967040  ;;  %p16_p4 = scmp.ge.s32.totalorder %s679_s18, 4   ;;  %s840_s12 = smov %s620_s13 }
 0x304   : > { %s841_s13 = smov %s624_s14  ;;  %s842_s14 = smov %s691_s21 }
 0x305   : > { %s843_s15 = smov %s679_s18  ;;  %18 = sbr.rel (!%p16_p4) target bundleno = 5 (0x5), region = 77 }
 0x30c   :  { %399 = vsyncpa [#allocation3], 1 }
 0x30d   :  { %401 = vsyncpa [#allocation3 + $0x1], 1 }
 0x30e   :  { %402 = vsyncpa [#allocation4], 1 }
 0x30f   :  { %404 = vsyncpa [#allocation4 + $0x1], 1 }

</bundles_post_ra>
